<compile_context>
chip_gen: v7x
topology: tpu7x:2x2x1
jax: 0.10.0
libtpu: 0.0.40
codegen_flags: <defaults>
</compile_context>

<pallas_src>
import jax
import jax.numpy as jnp
from jax import lax
from jax.experimental import pallas as pl
from jax.experimental.pallas import tpu as pltpu


def _embed_kernel(ids_smem, emb_ref, pos_ref, out_ref):
    """One grid step: gather TM token rows from the resident table + add pos.

    ids_smem: (B*S,)   int32  SMEM  flattened token ids (scalar-prefetched)
    emb_ref:  (V, D)   f32    VMEM  full embedding table (resident, 1-buffered)
    pos_ref:  (TM, D)  f32    VMEM  positional rows for this seq-tile
    out_ref:  (TM, D)  f32    VMEM  dense output slab (flattened rows)
    """
    b = pl.program_id(0)
    si = pl.program_id(1)
    num_s = pl.num_programs(1)
    tm = out_ref.shape[0]
    v = emb_ref.shape[0]
    base = (b * num_s + si) * tm  # first flattened row of this tile

    def gather_row(r, carry):
        tok = ids_smem[base + r]                 # scalar read from SMEM
        tok = jnp.clip(tok, 0, v - 1)            # never address outside table
        # Dynamic-row load from the resident table, fused positional add,
        # dense row store into the output slab.
        out_ref[pl.ds(r, 1), :] = (
            emb_ref[pl.ds(tok, 1), :] + pos_ref[pl.ds(r, 1), :]
        )
        return carry

    lax.fori_loop(0, tm, gather_row, 0)


def _choose_row_tile(seq_len, target=512):
    """Rows per grid step.  Whole sequence if small, else a multiple of 128
    that divides S (keeps the positional tile index static per step)."""
    if seq_len <= target:
        return seq_len
    for tm in (512, 256, 128):
        if seq_len % tm == 0:
            return tm
    return seq_len  # fall back: one tile covering the whole sequence


def _pick_vmem_limit_bytes():
    """~3/4 of physical VMEM, capped at 100 MiB; safe 32 MiB fallback."""
    default = 32 * 1024 * 1024
    try:
        cap = int(pltpu.get_tpu_info().vmem_capacity_bytes)
    except Exception:
        return default
    return max(default, min((cap * 3) // 4, 100 * 1024 * 1024))


def transformer_embedding_fwd(ids, emb_table, pos_table):
    """Pallas forward for TransformerEmbedding (sinusoid=True, eval dropout).

    ids:       (B, S) integer token ids
    emb_table: (vocab_size, d_model) float32
    pos_table: (max_len, d_model) float32 (max_len >= S)
    returns:   (B, S, d_model) float32
    """
    B, S = ids.shape
    V, D = emb_table.shape
    max_len = pos_table.shape[0]
    assert S <= max_len, "sequence longer than positional table"

    TM = _choose_row_tile(S)
    assert S % TM == 0
    num_s = S // TM
    num_rows = B * S

    ids_flat = ids.reshape(num_rows).astype(jnp.int32)
    pos_used = pos_table[:S].astype(emb_table.dtype)   # (S, D)

    vmem_limit = _pick_vmem_limit_bytes()

    # Residency gate: single-buffered table must fit in ~1/4 of the VMEM budget.
    table_bytes = V * D * jnp.dtype(emb_table.dtype).itemsize
    if table_bytes > vmem_limit // 4:
        # TODO(synk): manual DMA row-gather path (memory_space=pl.ANY) here.
        raise NotImplementedError(
            "embedding table too large for VMEM-resident gather")

    grid = (B, num_s)  # batch outermost -> well-populated parallel axis on v7x

    # Memory-bound gather: flops are just the positional adds.
    flops = num_rows * D
    bytes_accessed = (V * D * 4) + (S * D * 4) + (num_rows * 4) + (num_rows * D * 4)
    cost = pl.CostEstimate(flops=flops, transcendentals=0,
                           bytes_accessed=bytes_accessed)

    # Embedding table: constant block index -> fetched once, single-buffered.
    emb_spec = pl.BlockSpec((V, D), lambda b, si, ids_ref: (0, 0),
                            pipeline_mode=pl.Buffered(1))
    # Positional rows: index depends only on the inner seq-tile axis; when the
    # whole sequence fits in one tile it is grid-invariant -> single-buffer it.
    if num_s == 1:
        pos_spec = pl.BlockSpec((TM, D), lambda b, si, ids_ref: (si, 0),
                                pipeline_mode=pl.Buffered(1))
    else:
        pos_spec = pl.BlockSpec((TM, D), lambda b, si, ids_ref: (si, 0))

    out_flat = pl.pallas_call(
        _embed_kernel,
        out_shape=jax.ShapeDtypeStruct((num_rows, D), emb_table.dtype),
        grid_spec=pltpu.PrefetchScalarGridSpec(
            num_scalar_prefetch=1,
            grid=grid,
            in_specs=[emb_spec, pos_spec],
            out_specs=pl.BlockSpec(
                (TM, D), lambda b, si, ids_ref: (b * num_s + si, 0)),
        ),
        compiler_params=pltpu.CompilerParams(
            dimension_semantics=("parallel", "parallel"),
            vmem_limit_bytes=vmem_limit,
        ),
        cost_estimate=cost,
    )(ids_flat, emb_table, pos_used)

    return out_flat.reshape(B, S, D)


def make_sinusoidal_table(d_model, max_len):
    """Matches PositionalEmbedding.__init__ exactly."""
    pos = jnp.arange(max_len, dtype=jnp.float32)[:, None]          # (max_len, 1)
    _2i = jnp.arange(0, d_model, 2, dtype=jnp.float32)             # (d_model/2,)
    angle = pos / jnp.power(10000.0, _2i / d_model)                # (max_len, d_model/2)
    table = jnp.zeros((max_len, d_model), dtype=jnp.float32)
    table = table.at[:, 0::2].set(jnp.sin(angle))
    table = table.at[:, 1::2].set(jnp.cos(angle))
    return table


if __name__ == "__main__":
    # Small, deterministic problem sizes.
    vocab_size = 64
    d_model = 32
    max_len = 16
    B, S = 2, 8

    key = jax.random.PRNGKey(0)
    k_ids, k_emb = jax.random.split(key)

    # TokenEmbedding == nn.Embedding: default init N(0, 1).
    emb_table = jax.random.normal(k_emb, (vocab_size, d_model), dtype=jnp.float32)
    pos_table = make_sinusoidal_table(d_model, max_len)

    ids = jax.random.randint(k_ids, (B, S), minval=0, maxval=vocab_size,
                             dtype=jnp.int32)

    out = transformer_embedding_fwd(ids, emb_table, pos_table)
    out = jax.block_until_ready(out)

    # Pure-JAX reference (token gather + positional add, eval-mode dropout).
    ref = emb_table[ids] + pos_table[:S][None, :, :]
    assert out.shape == (B, S, d_model)
    assert jnp.allclose(out, ref, atol=1e-5, rtol=1e-5), "mismatch vs reference"

    print("KERNEL_OK")
</pallas_src>

<mosaic_0001>
module attributes {stable_mosaic.version = 11 : i64} {
  func.func @_embed_kernel(%arg0: i32, %arg1: i32, %arg2: memref<16xi32, #tpu.memory_space<smem>>, %arg3: memref<64x32xf32, #tpu.memory_space<vmem>>, %arg4: memref<8x32xf32, #tpu.memory_space<vmem>>, %arg5: memref<8x32xf32, #tpu.memory_space<vmem>>) attributes {dimension_semantics = [#tpu.dimension_semantics<parallel>, #tpu.dimension_semantics<parallel>], iteration_bounds = array<i64: 2, 1>, scalar_prefetch = 1 : i64, scratch_operands = 0 : i64, tpu.core_type = #tpu.core_type<tc>, window_params = [{pipeline_mode = #tpu.pipeline_mode<synchronous>, transform_indices = @transform_0, window_bounds = array<i64: 64, 32>}, {pipeline_mode = #tpu.pipeline_mode<synchronous>, transform_indices = @transform_1, window_bounds = array<i64: 8, 32>}, {transform_indices = @transform_2, window_bounds = array<i64: 8, 32>}]} {
    %c1_i32 = arith.constant 1 : i32
    %0 = arith.muli %arg0, %c1_i32 : i32
    %1 = arith.addi %0, %arg1 : i32
    %c8_i32 = arith.constant 8 : i32
    %2 = arith.muli %1, %c8_i32 : i32
    %c0_i32 = arith.constant 0 : i32
    %c8_i32_0 = arith.constant 8 : i32
    %3 = arith.addi %c0_i32, %c8_i32_0 : i32
    %c1_i32_1 = arith.constant 1 : i32
    scf.for %arg6 = %c0_i32 to %3 step %c1_i32_1  : i32 {
      %4 = arith.addi %2, %arg6 : i32
      %5 = arith.index_cast %4 : i32 to index
      %6 = memref.load %arg2[%5] : memref<16xi32, #tpu.memory_space<smem>>
      %c0_i32_3 = arith.constant 0 : i32
      %c63_i32 = arith.constant 63 : i32
      %7 = arith.maxsi %c0_i32_3, %6 : i32
      %8 = arith.minsi %c63_i32, %7 : i32
      %9 = arith.index_cast %8 : i32 to index
      %c0 = arith.constant 0 : index
      %10 = vector.load %arg3[%9, %c0] : memref<64x32xf32, #tpu.memory_space<vmem>>, vector<1x32xf32>
      %11 = arith.index_cast %arg6 : i32 to index
      %c0_4 = arith.constant 0 : index
      %12 = vector.load %arg4[%11, %c0_4] : memref<8x32xf32, #tpu.memory_space<vmem>>, vector<1x32xf32>
      %13 = arith.addf %10, %12 : vector<1x32xf32>
      %14 = arith.index_cast %arg6 : i32 to index
      %c0_5 = arith.constant 0 : index
      %15 = vector.load %arg5[%14, %c0_5] : memref<8x32xf32, #tpu.memory_space<vmem>>, vector<1x32xf32>
      tpu.vector_store %arg5[%14, %c0_5], %13 {strides = array<i32>} : memref<8x32xf32, #tpu.memory_space<vmem>>, vector<1x32xf32>,
    }
    %c8_i32_2 = arith.constant 8 : i32
    return
  }
  func.func @transform_0(%arg0: i32, %arg1: i32, %arg2: memref<16xi32, #tpu.memory_space<smem>>) -> (i32, i32) {
    %c0_i32 = arith.constant 0 : i32
    %c0_i32_0 = arith.constant 0 : i32
    %c0_i32_1 = arith.constant 0 : i32
    return %c0_i32, %c0_i32_0 : i32, i32
  }
  func.func @transform_1(%arg0: i32, %arg1: i32, %arg2: memref<16xi32, #tpu.memory_space<smem>>) -> (i32, i32) {
    %c0_i32 = arith.constant 0 : i32
    %c0_i32_0 = arith.constant 0 : i32
    return %arg1, %c0_i32 : i32, i32
  }
  func.func @transform_2(%arg0: i32, %arg1: i32, %arg2: memref<16xi32, #tpu.memory_space<smem>>) -> (i32, i32) {
    %c1_i32 = arith.constant 1 : i32
    %0 = arith.muli %arg0, %c1_i32 : i32
    %1 = arith.addi %0, %arg1 : i32
    %c0_i32 = arith.constant 0 : i32
    %c0_i32_0 = arith.constant 0 : i32
    return %1, %c0_i32 : i32, i32
  }
}

</mosaic_0001>

<bundles_post_ra>
// kernel: tpu_custom_call.1
= control target key start
LH: loop header
LB: loop body
LE: loop exit
PB: predicated region body
PF: predicated region fallthrough
CT: control target
= control target key end

     0   :  { %s598_s0 = inlined_call_operand.vmem [shape: s32[16], index: 0, kind: input, shape index: {}]   ;;  %s599_s1 = inlined_call_operand.vmem [shape: f32[64,32], index: 1, kind: input, shape index: {}]   ;;  %s600_s2 = inlined_call_operand.vmem [shape: f32[8,32], index: 2, kind: input, shape index: {}]   ;;  %s601_s3 = inlined_call_operand.hbm [shape: f32[16,32], index: 3, kind: output, shape index: {}]  }
   0x1   :  { %s8_s14 = sshll.u32 %s598_s0, 4  ;;  %s9_s14 = int_to_ptr.vmem [resolvable:$true] %s8_s14 }
   0x2   :  { %s359_s15 = scalar_lea.vmem %s9_s14, 16  ;;  %p364_p1 = scmp.lt.s32.totalorder %s9_s14, %s9_s14 }
   0x3   :  { %p360_p0 = scmp.ne.s32.totalorder %s9_s14, %s359_s15  ;;  %p365_p2 = scmp.lt.s32.totalorder %s359_s15, %s359_s15 }
   0x5   :  { %p366_p3 = por %p365_p2, %p364_p1 }
   0x7   :  { %p367_p4 = pnand %p366_p3, %p360_p0 }
   0x9   :  { %370 = shalt.err (!%p367_p4)  }
   0xa   :  { %s461_s16 = smov [#allocation3]  }
   0xb   :  { %11 = dma.vmem_to_smem %s9_s14, 16, %s461_s16, [#allocation2] }
   0xc   :  { %427 = dma.done.wait [#allocation2], 16 }
   0xd   :  { %428 = vsyncadd [#allocation2], 4294967280 }
   0xe   :  { %13 = sfence }
   0xf   :  { %14 = vsyncpa [#allocation5], 0 }
  0x10   :  { %16 = vsyncpa [#allocation5 + $0x1], 0  ;;  %s486_s17 = smov 0   ;;  %s488_s18 = smov 0  }
  0x11   :  { %s490_s0 = smov 0   ;;  %s492_s19 = smov 0  }
  0x12   :  { %s494_s20 = smov 0   ;;  %s496_s21 = smov 0  }
  0x13 LB: > { %s277_s22 = sadd.s32 4294967295, %s455_s21   ;;  %s278_s23 = sadd.s32 4294967294, %s455_s21   ;;  %s455_s21 = sphi %s496_s21, %s22_s21   ;;  %s451_s20 = sphi %s494_s20, %s608_s20   ;;  %s447_s19 = sphi %s492_s19, %s607_s19   ;;  %s443_s0 = sphi %s490_s0, %s606_s0   ;;  %s439_s18 = sphi %s488_s18, %s605_s18   ;;  %s435_s17 = sphi %s486_s17, %s604_s17  }
  0x14   : > { %s34_s24 = sadd.s32 1, %s451_s20  ;;  %s90_s25 = sadd.s32 1, %s443_s0 }
  0x15   : > { %p36_p5 = scmp.ge.s32.totalorder %s34_s24, 2  ;;  %p100_p6 = scmp.ne.s32.totalorder %s443_s0, %s439_s18 }
  0x16   : > { %p101_p7 = scmp.eq.s32.totalorder %s277_s22, 1  ;;  %p106_p8 = scmp.ne.s32.totalorder %s439_s18, %s435_s17 }
  0x17   : > { %s610_s24 = smov (%p36_p5, %s34_s24), 0  ;;  %p107_p10 = scmp.eq.s32.totalorder %s278_s23, 1 }
  0x18   : > { %p526_p9 = por %p101_p7, %p100_p6  ;;  %s87_s27 = ssub.s32 %s451_s20, %s610_s24 }
  0x19   : > { %p281_p11 = scmp.ge.s32.totalorder %s455_s21, 1  ;;  %p88_p12 = scmp.eq.s32.totalorder %s87_s27, 0 }
  0x1a   : > { %p533_p13 = por %p107_p10, %p106_p8  ;;  %p135_p0 = scmp.lt.s32.totalorder %s455_s21, 3 }
  0x1b   : > { %s539_s29 = scalar_select %p88_p12, %s443_s0, %s90_s25  }
  0x1c   : > { %p136_p1 = pnand %p281_p11, %p135_p0 }
  0x1d   : > { %s153_s30 = sand.u32 (!%p136_p1), 1, %s439_s18   ;;  %s283_s4 = sshll.u32 (!%p136_p1), %s447_s19, 3 }
  0x1e   : > { %139 = sbr.rel (%p136_p1) target bundleno = 70 (0x46), region = 28  ;;  %s282_s5 = sshll.u32 (!%p136_p1), %s153_s30, 3 }
  0x1f   : > { %s155_s6 = scalar_lea.vmem (!%p136_p1), [#allocation4], %s282_s5  ;;  %s457_s7 = smov (!%p136_p1), 0  }
  0x25 LB: >> { %s169_s8 = sadd.s32 %s459_s7, %s283_s4  ;;  %s177_s12 = scalar_lea.vmem %s600_s2, %s459_s7  ;;  %vm181_vm0 = vcmask 253952   ;;  %s459_s7 = sphi %s457_s7, %s168_s7  }
  0x26   : >> { %s170_s9 = sld [smem:[#allocation3 + %s169_s8]]  ;;  %v178_v0 = vld [vmem:[%s177_s12] sm:$0x1]  ;;  %s180_s16 = scalar_lea.vmem %s155_s6, %s459_s7 [#allocation4] }
  0x27   : >> { %s168_s7 = sadd.s32 1, %s459_s7  }
  0x28   : >> { %p165_p4 = scmp.ge.s32.totalorder %s168_s7, 8  }
  0x29   : > { %s290_s22 = sshll.u32 (%p165_p4), %s447_s19, 7  ;;  %s198_s5 = sshll.u32 (%p165_p4), %s155_s6, 4  ;;  %s199_s5 = int_to_ptr.vmem [resolvable:$true] %s198_s5 }
  0x2a   : > { %s555_s27 = scalar_lea.hbm (%p165_p4), %s601_s3, %s290_s22  ;;  %s184_s8 = scalar_lea.sflag (%p165_p4), [#allocation5], %s153_s30 }
  0x2b   : > { %s462_s7 = smov (%p165_p4), [#allocation4]  }
  0x2c   : >> { %p171_p2 = scmp.gt.s32.totalorder %s170_s9, 0  ;;  %p284_p3 = scmp.lt.s32.totalorder %s170_s9, 63 }
  0x2d   : > { %s375_s10 = sshll.u32 (%p165_p4), %s462_s7, 4  ;;  %s376_s10 = int_to_ptr.vmem [resolvable:$false] %s375_s10 }
  0x2e   : >> { %s612_s9 = smov (!%p171_p2, %s170_s9), 0  ;;  %167 = sbr.rel (!%p165_p4) target bundleno = 37 (0x25), region = 73 }
  0x2f   : >> { %s614_s9 = smov (!%p284_p3, %s612_s9), 63  ;;  %s377_s4 = scalar_lea.vmem (%p165_p4), %s376_s10, 256 }
  0x30   : >> { %s175_s15 = scalar_lea.vmem %s599_s1, %s614_s9  ;;  %s371_s9 = scalar_lea.vmem (%p165_p4), %s199_s5, 128 }
  0x31   : >> { %v176_v1 = vld [vmem:[%s175_s15] sm:$0x1]  ;;  %p372_p5 = scmp.ne.s32.totalorder (%p165_p4), %s199_s5, %s371_s9  ;;  %p378_p8 = scmp.lt.s32.totalorder (%p165_p4), %s199_s5, %s376_s10 }
  0x32   : >> { %v179_v2 = vadd.f32 %v178_v0, %v176_v1  ;;  %p379_p10 = scmp.lt.s32.totalorder (%p165_p4), %s377_s4, %s371_s9 }
  0x33   : > { %p373_p6 = pnand (%p165_p4), %p372_p5, %p526_p9 }
  0x34   : >> { %182 = vst.msk [vmem:[%s180_s16] sm:$0x1] %vm181_vm0, %v179_v2  ;;  %p380_p11 = por (%p165_p4), %p379_p10, %p378_p8 }
  0x35   : > { %p374_p7 = pneg %p373_p6 }
  0x37   : > { %p381_p12 = pnand %p380_p11, %p374_p7 }
  0x39   : > { %384 = shalt.err (!%p381_p12)
}
  0x3a   : > { %s385_s19 = scalar_lea.hbm %s555_s27, 128  ;;  %s389_s11 = scalar_lea.hbm %s601_s3, 256 }
  0x3b   : > { %p386_p0 = scmp.ne.s32.totalorder %s555_s27, %s385_s19  ;;  %p390_p3 = scmp.lt.u32.totalorder %s555_s27, %s601_s3 }
  0x3c   : > { %p391_p4 = scmp.lt.u32.totalorder %s389_s11, %s385_s19  ;;  %p393_p6 = scmp.lt.u32.totalorder %s385_s19, %s555_s27 }
  0x3d   : > { %p387_p1 = pnand %p386_p0, %p526_p9 }
  0x3e   : > { %p392_p5 = por %p391_p4, %p390_p3 }
  0x3f   : > { %p388_p2 = pneg %p387_p1 }
  0x40   : > { %p394_p7 = por %p393_p6, %p392_p5 }
  0x42   : > { %p395_p8 = pnand %p394_p7, %p388_p2 }
  0x44   : > { %398 = shalt.err (!%p395_p8)
}
  0x45   : > { %295 = dma.vmem_to_hbm [thread:$0]  (%p526_p9), %s199_s5, 128, %s555_s27, %s184_s8  }
  0x46 PF: > { %p301_p10 = scmp.ge.s32.totalorder %s455_s21, 2  ;;  %s210_s14 = sand.u32 1, %s435_s17  }
  0x47   : > { %s211_s15 = scalar_lea.sflag [#allocation5], %s210_s14 }
  0x48   : > { %p298_p11 = pnand %p301_p10, %p533_p13 }
  0x4a   : > { %430 = dma.done.wait (!%p298_p11), %s211_s15, 128  }
  0x4b   : > { %432 = vsyncadd (!%p298_p11), %s211_s15, 4294967168  ;;  %s22_s21 = sadd.s32 1, %s455_s21   ;;  %s604_s17 = smov %s439_s18 }
  0x4c   : > { %p19_p12 = scmp.ge.s32.totalorder %s22_s21, 4   ;;  %s605_s18 = smov %s443_s0 }
  0x4d   : > { %s606_s0 = smov %s539_s29  ;;  %s607_s19 = smov %s451_s20 }
  0x4e   : > { %s608_s20 = smov %s610_s24  ;;  %21 = sbr.rel (!%p19_p12) target bundleno = 19 (0x13), region = 84 }
  0x55   :  { %216 = vsyncpa [#allocation5], 1 }
  0x56   :  { %218 = vsyncpa [#allocation5 + $0x1], 1 }

</bundles_post_ra>
